<compile_context>
chip_gen: v7x
topology: tpu7x:2x2x1
jax: 0.10.0
libtpu: 0.0.40
codegen_flags: <defaults>
</compile_context>

<pallas_src>
import jax
import jax.numpy as jnp
from jax.experimental import pallas as pl
from jax.experimental.pallas import tpu as pltpu


_NCORES = 2  # leading "parallel" grid axis (v7x megacore; harmless on 1-TC chips)


def _round_up(x, m):
    return ((x + m - 1) // m) * m


def _vmem_limit_bytes():
    """Per-generation scoped-VMEM budget (<=64 MiB, ~3/4 of physical)."""
    cap = 128 * 1024 * 1024
    try:
        info = pltpu.get_tpu_info()
        cap = int(getattr(info, "vmem_capacity_bytes", cap))
    except Exception:
        pass
    return min(64 * 1024 * 1024, (cap * 3) // 4)


def l1_grad_loss(img1, img2):
    """mean(|dx(img1)-dx(img2)|) + mean(|dy(img1)-dy(img2)|) for NCHW inputs."""
    assert img1.shape == img2.shape
    N, C, H, W = img1.shape
    assert H >= 2 and W >= 2, "spatial dims must be >= 2 for finite differences"
    NC = N * C
    HW = H * W
    HWp = _round_up(HW, 128)          # lane-aligned flattened plane length

    itemsize = img1.dtype.itemsize
    granule = max(8, 32 // itemsize)  # sublane tile: 8 (f32), 16 (bf16), 32 (int8)

    # Lane-dense layout: each plane becomes one contiguous row of length HW.
    a = img1.reshape(NC, HW)
    b = img2.reshape(NC, HW)

    # --- Block sizing against the real VMEM live set -------------------------
    vmem_limit = _vmem_limit_bytes()
    budget = max(8 * 1024 * 1024, vmem_limit - 8 * 1024 * 1024)
    # accumulator + two resident masks (double-buffered) are fixed costs:
    fixed_bytes = 8 * HWp * 4 + 2 * 2 * HWp * 4
    # per plane-row: 2 inputs x 2 pipeline buffers (native dtype) + ~4 f32 temps
    per_tb_bytes = HWp * (2 * 2 * itemsize + 4 * 4)
    tb_cap = (budget - fixed_bytes) // per_tb_bytes
    tb_cap = max(granule, (tb_cap // granule) * granule)

    per_core = pl.cdiv(NC, _NCORES)
    TB = min(tb_cap, _round_up(per_core, granule))   # planes per grid step
    S = pl.cdiv(per_core, TB)                        # grid steps per core
    NC_pad = _NCORES * S * TB

    pad_nc = NC_pad - NC
    pad_hw = HWp - HW
    if pad_nc or pad_hw:
        # Zero padding contributes 0 (zero planes) or is masked (lane padding).
        a = jnp.pad(a, ((0, pad_nc), (0, pad_hw)))
        b = jnp.pad(b, ((0, pad_nc), (0, pad_hw)))

    # --- Validity masks, pre-scaled by the per-mean normalizers --------------
    # Position j of the rolled difference holds |d[j] - d[j-1]| (shift=1) and
    # |d[j] - d[j-W]| (shift=W).  Valid horizontal pairs: j % W != 0 (same
    # row); valid vertical pairs: j >= W.  Both restricted to the real HW.
    inv_nx = 1.0 / float(NC * H * (W - 1))
    inv_ny = 1.0 / float(NC * (H - 1) * W)
    j = jnp.arange(HWp, dtype=jnp.int32)
    mx = jnp.where((j % W != 0) & (j < HW), inv_nx, 0.0)
    my = jnp.where((j >= W) & (j < HW), inv_ny, 0.0)
    mx = mx.astype(jnp.float32).reshape(1, HWp)
    my = my.astype(jnp.float32).reshape(1, HWp)

    def kernel(a_ref, b_ref, mx_ref, my_ref, o_ref, acc_ref):
        s = pl.program_id(1)

        @pl.when(s == 0)
        def _init():
            acc_ref[...] = jnp.zeros_like(acc_ref)

        # Image difference once; gradient of the difference == difference of
        # gradients.  Compute in f32 regardless of input dtype.
        d = a_ref[...].astype(jnp.float32) - b_ref[...].astype(jnp.float32)

        # Full-width, lane-aligned shifted differences on the XLU.
        gx = jnp.abs(d - pltpu.roll(d, shift=1, axis=1))   # |d[j] - d[j-1]|
        gy = jnp.abs(d - pltpu.roll(d, shift=W, axis=1))   # |d[j] - d[j-W]|

        # Masks fold both validity and the 1/N normalization -> one accumulator.
        t = gx * mx_ref[...] + gy * my_ref[...]            # (TB, HWp)

        # Pure-VPU partial reduction into an (8, HWp) accumulator (vreg-row adds);
        # the cross-sublane / cross-lane reduce is deferred to the finalize.
        acc_ref[...] += t.reshape(TB // 8, 8, HWp).sum(axis=0)

        # Finalize once per core: single scalar reduce + single tiny store.
        @pl.when(s == pl.num_programs(1) - 1)
        def _fin():
            o_ref[...] = jnp.sum(acc_ref[...]).reshape(1, 1, 1)

    partials = pl.pallas_call(
        kernel,
        out_shape=jax.ShapeDtypeStruct((_NCORES, 1, 1), jnp.float32),
        grid_spec=pltpu.PrefetchScalarGridSpec(
            num_scalar_prefetch=0,
            grid=(_NCORES, S),
            in_specs=[
                pl.BlockSpec((TB, HWp), lambda c, s: (c * S + s, 0)),
                pl.BlockSpec((TB, HWp), lambda c, s: (c * S + s, 0)),
                # Constant index_map => masks stay resident in VMEM (no re-DMA).
                pl.BlockSpec((1, HWp), lambda c, s: (0, 0)),
                pl.BlockSpec((1, HWp), lambda c, s: (0, 0)),
            ],
            out_specs=pl.BlockSpec((1, 1, 1), lambda c, s: (c, 0, 0)),
            scratch_shapes=[
                pltpu.VMEM((8, HWp), jnp.float32),   # combined partial sums
            ],
        ),
        compiler_params=pltpu.CompilerParams(
            dimension_semantics=("parallel", "arbitrary"),
            vmem_limit_bytes=vmem_limit,
        ),
    )(a, b, mx, my)

    return jnp.sum(partials)


def _l1_grad_loss_ref(img1, img2):
    """Pure-JAX reference for correctness checking."""
    a = img1.astype(jnp.float32)
    b = img2.astype(jnp.float32)
    gx_a = a[:, :, :, 1:] - a[:, :, :, :-1]
    gx_b = b[:, :, :, 1:] - b[:, :, :, :-1]
    gy_a = a[:, :, 1:, :] - a[:, :, :-1, :]
    gy_b = b[:, :, 1:, :] - b[:, :, :-1, :]
    return jnp.mean(jnp.abs(gx_a - gx_b)) + jnp.mean(jnp.abs(gy_a - gy_b))


if __name__ == "__main__":
    key = jax.random.PRNGKey(0)
    k1, k2 = jax.random.split(key)
    shape = (2, 4, 16, 16)  # N, C, H, W
    img1 = jax.random.normal(k1, shape, dtype=jnp.float32)
    img2 = jax.random.normal(k2, shape, dtype=jnp.float32)

    loss = jax.block_until_ready(l1_grad_loss(img1, img2))
    ref = jax.block_until_ready(_l1_grad_loss_ref(img1, img2))

    assert jnp.allclose(loss, ref, rtol=1e-5, atol=1e-5), (loss, ref)
    print("KERNEL_OK")
</pallas_src>

<mosaic_0001>
module attributes {stable_mosaic.version = 11 : i64} {
  func.func @kernel(%arg0: i32, %arg1: i32, %arg2: memref<8x256xf32, #tpu.memory_space<vmem>>, %arg3: memref<8x256xf32, #tpu.memory_space<vmem>>, %arg4: memref<1x256xf32, #tpu.memory_space<vmem>>, %arg5: memref<1x256xf32, #tpu.memory_space<vmem>>, %arg6: memref<1x1x1xf32, #tpu.memory_space<vmem>>, %arg7: memref<8x256xf32, #tpu.memory_space<vmem>>) attributes {dimension_semantics = [#tpu.dimension_semantics<parallel>, #tpu.dimension_semantics<arbitrary>], iteration_bounds = array<i64: 2, 1>, scalar_prefetch = 0 : i64, scratch_operands = 1 : i64, tpu.core_type = #tpu.core_type<tc>, window_params = [{transform_indices = @transform_0, window_bounds = array<i64: 8, 256>}, {transform_indices = @transform_1, window_bounds = array<i64: 8, 256>}, {pipeline_mode = #tpu.pipeline_mode<synchronous>, transform_indices = @transform_2, window_bounds = array<i64: 1, 256>}, {pipeline_mode = #tpu.pipeline_mode<synchronous>, transform_indices = @transform_3, window_bounds = array<i64: 1, 256>}, {transform_indices = @transform_4, window_bounds = array<i64: 1, 1, 1>}]} {
    %c0_i32 = arith.constant 0 : i32
    %0 = arith.cmpi eq, %arg1, %c0_i32 : i32
    %1 = arith.extui %0 : i1 to i32
    %c0_i32_0 = arith.constant 0 : i32
    %2 = arith.cmpi ne, %1, %c0_i32_0 : i32
    scf.if %2 {
      %cst_14 = arith.constant 0.000000e+00 : f32
      %27 = vector.broadcast %cst_14 : f32 to vector<8x256xf32>
      %c0_15 = arith.constant 0 : index
      %c0_16 = arith.constant 0 : index
      %28 = vector.load %arg7[%c0_15, %c0_16] : memref<8x256xf32, #tpu.memory_space<vmem>>, vector<8x256xf32>
      tpu.vector_store %arg7[%c0_15, %c0_16], %27 {strides = array<i32>} : memref<8x256xf32, #tpu.memory_space<vmem>>, vector<8x256xf32>,
    } else {
    }
    %c0 = arith.constant 0 : index
    %c0_1 = arith.constant 0 : index
    %3 = vector.load %arg2[%c0, %c0_1] : memref<8x256xf32, #tpu.memory_space<vmem>>, vector<8x256xf32>
    %c0_2 = arith.constant 0 : index
    %c0_3 = arith.constant 0 : index
    %4 = vector.load %arg3[%c0_2, %c0_3] : memref<8x256xf32, #tpu.memory_space<vmem>>, vector<8x256xf32>
    %5 = arith.subf %3, %4 : vector<8x256xf32>
    %c1_i32 = arith.constant 1 : i32
    %6 = tpu.dynamic_rotate %5 by %c1_i32 dim 1 : vector<8x256xf32>, i32 -> vector<8x256xf32>
    %7 = arith.subf %5, %6 : vector<8x256xf32>
    %8 = math.absf %7 : vector<8x256xf32>
    %c16_i32 = arith.constant 16 : i32
    %9 = tpu.dynamic_rotate %5 by %c16_i32 dim 1 : vector<8x256xf32>, i32 -> vector<8x256xf32>
    %10 = arith.subf %5, %9 : vector<8x256xf32>
    %11 = math.absf %10 : vector<8x256xf32>
    %c0_4 = arith.constant 0 : index
    %c0_5 = arith.constant 0 : index
    %12 = vector.load %arg4[%c0_4, %c0_5] : memref<1x256xf32, #tpu.memory_space<vmem>>, vector<1x256xf32>
    %13 = vector.broadcast %12 : vector<1x256xf32> to vector<8x256xf32>
    %14 = arith.mulf %8, %13 : vector<8x256xf32>
    %c0_6 = arith.constant 0 : index
    %c0_7 = arith.constant 0 : index
    %15 = vector.load %arg5[%c0_6, %c0_7] : memref<1x256xf32, #tpu.memory_space<vmem>>, vector<1x256xf32>
    %16 = vector.broadcast %15 : vector<1x256xf32> to vector<8x256xf32>
    %17 = arith.mulf %11, %16 : vector<8x256xf32>
    %18 = arith.addf %14, %17 : vector<8x256xf32>
    %c0_8 = arith.constant 0 : index
    %c0_9 = arith.constant 0 : index
    %19 = vector.load %arg7[%c0_8, %c0_9] : memref<8x256xf32, #tpu.memory_space<vmem>>, vector<8x256xf32>
    %20 = vector.shape_cast %18 : vector<8x256xf32> to vector<1x8x256xf32>
    %cst = arith.constant dense<0.000000e+00> : vector<8x256xf32>
    %21 = vector.multi_reduction <add>, %20, %cst [0] : vector<1x8x256xf32> to vector<8x256xf32>
    %22 = arith.addf %19, %21 : vector<8x256xf32>
    %c0_10 = arith.constant 0 : index
    %c0_11 = arith.constant 0 : index
    %23 = vector.load %arg7[%c0_10, %c0_11] : memref<8x256xf32, #tpu.memory_space<vmem>>, vector<8x256xf32>
    tpu.vector_store %arg7[%c0_10, %c0_11], %22 {strides = array<i32>} : memref<8x256xf32, #tpu.memory_space<vmem>>, vector<8x256xf32>,
    %c0_i32_12 = arith.constant 0 : i32
    %24 = arith.cmpi eq, %arg1, %c0_i32_12 : i32
    %25 = arith.extui %24 : i1 to i32
    %c0_i32_13 = arith.constant 0 : i32
    %26 = arith.cmpi ne, %25, %c0_i32_13 : i32
    scf.if %26 {
      %c0_14 = arith.constant 0 : index
      %c0_15 = arith.constant 0 : index
      %27 = vector.load %arg7[%c0_14, %c0_15] : memref<8x256xf32, #tpu.memory_space<vmem>>, vector<8x256xf32>
      %28 = vector.shape_cast %27 : vector<8x256xf32> to vector<1x8x256xf32>
      %cst_16 = arith.constant dense<0.000000e+00> : vector<1xf32>
      %29 = vector.multi_reduction <add>, %28, %cst_16 [1, 2] : vector<1x8x256xf32> to vector<1xf32>
      %30 = vector.shape_cast %29 : vector<1xf32> to vector<1x1x1xf32>
      %31 = vector.extract %30[0, 0, 0] : f32 from vector<1x1x1xf32>
      %32 = vector.broadcast %31 : f32 to vector<1x1x1xf32>
      %c0_17 = arith.constant 0 : index
      %c0_18 = arith.constant 0 : index
      %c0_19 = arith.constant 0 : index
      %33 = vector.load %arg6[%c0_17, %c0_18, %c0_19] : memref<1x1x1xf32, #tpu.memory_space<vmem>>, vector<1x1x1xf32>
      tpu.vector_store %arg6[%c0_17, %c0_18, %c0_19], %32 {strides = array<i32>} : memref<1x1x1xf32, #tpu.memory_space<vmem>>, vector<1x1x1xf32>,
    } else {
    }
    return
  }
  func.func @transform_0(%arg0: i32, %arg1: i32) -> (i32, i32) {
    %c1_i32 = arith.constant 1 : i32
    %0 = arith.muli %arg0, %c1_i32 : i32
    %1 = arith.addi %0, %arg1 : i32
    %c0_i32 = arith.constant 0 : i32
    %c0_i32_0 = arith.constant 0 : i32
    return %1, %c0_i32 : i32, i32
  }
  func.func @transform_1(%arg0: i32, %arg1: i32) -> (i32, i32) {
    %c1_i32 = arith.constant 1 : i32
    %0 = arith.muli %arg0, %c1_i32 : i32
    %1 = arith.addi %0, %arg1 : i32
    %c0_i32 = arith.constant 0 : i32
    %c0_i32_0 = arith.constant 0 : i32
    return %1, %c0_i32 : i32, i32
  }
  func.func @transform_2(%arg0: i32, %arg1: i32) -> (i32, i32) {
    %c0_i32 = arith.constant 0 : i32
    %c0_i32_0 = arith.constant 0 : i32
    %c0_i32_1 = arith.constant 0 : i32
    return %c0_i32, %c0_i32_0 : i32, i32
  }
  func.func @transform_3(%arg0: i32, %arg1: i32) -> (i32, i32) {
    %c0_i32 = arith.constant 0 : i32
    %c0_i32_0 = arith.constant 0 : i32
    %c0_i32_1 = arith.constant 0 : i32
    return %c0_i32, %c0_i32_0 : i32, i32
  }
  func.func @transform_4(%arg0: i32, %arg1: i32) -> (i32, i32, i32) {
    %c0_i32 = arith.constant 0 : i32
    %c0_i32_0 = arith.constant 0 : i32
    %c0_i32_1 = arith.constant 0 : i32
    return %arg0, %c0_i32, %c0_i32_0 : i32, i32, i32
  }
}

</mosaic_0001>

<bundles_post_ra>
// kernel: tpu_custom_call.1
= control target key start
LH: loop header
LB: loop body
LE: loop exit
PB: predicated region body
PF: predicated region fallthrough
CT: control target
= control target key end

     0   :  { %s1155_s0 = inlined_call_operand.hbm [shape: f32[16,256], index: 0, kind: input, shape index: {}]   ;;  %s1156_s1 = inlined_call_operand.hbm [shape: f32[16,256], index: 1, kind: input, shape index: {}]   ;;  %s1157_s2 = inlined_call_operand.hbm [shape: f32[1,256], index: 2, kind: input, shape index: {}]   ;;  %s1158_s3 = inlined_call_operand.hbm [shape: f32[1,256], index: 3, kind: input, shape index: {}]   ;;  %s1159_s4 = inlined_call_operand.hbm [shape: f32[2,1,1], index: 4, kind: output, shape index: {}]  }
   0x1   :  { %1165 = sst [smem:[#allocation18_spill]] %s1157_s2 }
   0x2   :  { %1166 = sst [smem:[#allocation19_spill]] %s1158_s3 }
   0x3   :  { %9 = vsyncpa [#allocation4], 0 }
   0x4   :  { %11 = vsyncpa [#allocation4 + $0x1], 0 }
   0x5   :  { %12 = vsyncpa [#allocation7], 0 }
   0x6   :  { %14 = vsyncpa [#allocation7 + $0x1], 0 }
   0x7   :  { %15 = vsyncpa [#allocation10], 0 }
   0x8   :  { %16 = vsyncpa [#allocation5], 0 }
   0x9   :  { %18 = vsyncpa [#allocation5 + $0x1], 0  ;;  %s877_s15 = smov 0   ;;  %s879_s16 = smov 0  }
   0xa   :  { %s881_s17 = smov 0   ;;  %s883_s18 = smov 0  }
   0xb   :  { %s885_s19 = smov 0   ;;  %s887_s20 = smov 0  }
   0xc LB: > { %s908_s21 = sadd.s32 4294967295, %s843_s20   ;;  %s520_s22 = sadd.s32 4294967294, %s843_s20   ;;  %s843_s20 = sphi %s887_s20, %s24_s20   ;;  %s839_s19 = sphi %s885_s19, %s1191_s19   ;;  %s835_s18 = sphi %s883_s18, %s1190_s18   ;;  %s831_s17 = sphi %s881_s17, %s1189_s17   ;;  %s827_s16 = sphi %s879_s16, %s1188_s16   ;;  %s823_s15 = sphi %s877_s15, %s1187_s15  }
   0xd   : > { %p58_p0 = scmp.ne.s32.totalorder %s827_s16, %s823_s15  ;;  %p1160_p1 = scmp.eq.s32.totalorder %s908_s21, 0 }
   0xe   : > { %p158_p3 = scmp.eq.s32.totalorder %s520_s22, 1  ;;  %p521_p5 = scmp.ge.s32.totalorder %s843_s20, 1 }
   0xf   : > { %p917_p4 = por %p1160_p1, %p58_p0  ;;  %p165_p7 = scmp.lt.s32.totalorder %s843_s20, 3 }
  0x10   : > { %p922_p6 = por %p158_p3, %p58_p0  ;;  %s845_s26 = smov [#allocation8]  }
  0x11   : > { %s1167_s23 = scalar_select %p917_p4, 1, 0 }
  0x12   : > { %s1168_s24 = scalar_select %p922_p6, 1, 0 }
  0x13   : > { %p927_p8 = pnand %p521_p5, %p165_p7  ;;  %s178_s27 = sshll.u32 %s845_s26, 4  ;;  %s179_s27 = int_to_ptr.vmem [resolvable:$true] %s178_s27 }
  0x14   : > { %s846_s28 = smov [#allocation9]   ;;  %s1171_s2 = sld [smem:[#allocation18_spill]] }
  0x15   : > { %s1169_s25 = scalar_select %p927_p8, 1, 0 }
  0x16   : > { %p557_p10 = pneg %p927_p8  ;;  %s189_s29 = sshll.u32 %s846_s28, 4  ;;  %s940_s29 = int_to_ptr.vmem [resolvable:$true] %s189_s29 }
  0x18   : > { %p936_p11 = pnand %p557_p10, %p1160_p1 }
  0x1a   : > { %s633_s7 = scalar_lea.hbm %s1171_s2, 32  ;;  %p635_p13 = pneg %p936_p11 }
  0x1b   : > { %p634_p12 = scmp.ne.s32.totalorder %s1171_s2, %s633_s7  ;;  %p640_p5 = scmp.lt.u32.totalorder %s633_s7, %s1171_s2 }
  0x1d   : > { %p636_p0 = pnand %p635_p13, %p634_p12 }
  0x1f   : > { %p637_p3 = pneg %p636_p0 }
  0x21   : > { %p642_p7 = pnand %p640_p5, %p637_p3 }
  0x23   : > { %645 = shalt.err (!%p642_p7)
}
  0x24   : > { %s646_s12 = scalar_lea.vmem %s179_s27, 32  ;;  %p654_p2 = scmp.lt.s32.totalorder %s179_s27, %s179_s27 }
  0x25   : > { %p647_p10 = scmp.ne.s32.totalorder %s179_s27, %s646_s12  ;;  %p655_p6 = scmp.lt.s32.totalorder %s646_s12, %s646_s12 }
  0x27   : > { %p649_p9 = pnand %p647_p10, %p635_p13  ;;  %p656_p4 = por %p655_p6, %p654_p2 }
  0x29   : > { %p650_p1 = pneg %p649_p9 }
  0x2b   : > { %p657_p8 = pnand %p656_p4, %p650_p1 }
  0x2d   : > { %660 = shalt.err (!%p657_p8)
}
  0x2e   : > { %560 = dma.hbm_to_vmem [thread:$0]  (!%p936_p11), %s1171_s2, 32, %s179_s27, [#allocation7]  }
  0x2f   : > { %s1172_s3 = sld [smem:[#allocation19_spill]] }
  0x35   : > { %s661_s28 = scalar_lea.hbm %s1172_s3, 32 }
  0x36   : > { %p662_p9 = scmp.ne.s32.totalorder %s1172_s3, %s661_s28  ;;  %p668_p4 = scmp.lt.u32.totalorder %s661_s28, %s1172_s3 }
  0x38   : > { %p664_p2 = pnand %p662_p9, %p635_p13 }
  0x3a   : > { %p665_p1 = pneg %p664_p2 }
  0x3c   : > { %p670_p6 = pnand %p668_p4, %p665_p1 }
  0x3e   : > { %673 = shalt.err (!%p670_p6)
}
  0x3f   : > { %s674_s27 = scalar_lea.vmem %s940_s29, 32  ;;  %p682_p3 = scmp.lt.s32.totalorder %s940_s29, %s940_s29 }
  0x40   : > { %p675_p8 = scmp.ne.s32.totalorder %s940_s29, %s674_s27  ;;  %p683_p5 = scmp.lt.s32.totalorder %s674_s27, %s674_s27 }
  0x42   : > { %p677_p12 = pnand %p675_p8, %p635_p13  ;;  %p684_p7 = por %p683_p5, %p682_p3 }
  0x44   : > { %p678_p0 = pneg %p677_p12 }
  0x46   : > { %p685_p10 = pnand %p684_p7, %p678_p0 }
  0x48   : > { %688 = shalt.err (!%p685_p10)
}
  0x49   : > { %563 = dma.hbm_to_vmem [thread:$0]  (!%p936_p11), %s1172_s3, 32, %s940_s29, [#allocation10]  }
  0x4a   : > { %s36_s11 = sadd.s32 1, %s839_s19  ;;  %s45_s12 = sadd.s32 1, %s831_s17 }
  0x4b   : > { %p38_p13 = scmp.ge.s32.totalorder %s36_s11, 2  ;;  %p52_p9 = scmp.ne.s32.totalorder %s831_s17, %s827_s16 }
  0x4c   : > { %p53_p2 = scmp.eq.s32.totalorder %s843_s20, 0  ;;  %p577_p1 = scmp.lt.s32.totalorder %s843_s20, 2 }
  0x4d   : > { %s1193_s11 = smov (%p38_p13, %s36_s11), 0  ;;  %p1174_p6 = scmp.eq.s32.totalorder %s908_s21, 1 }
  0x4e   : > { %1173 = sst [smem:[#allocation17_spill]] %s1193_s11  ;;  %p54_p4 = por %p53_p2, %p52_p9 }
  0x4f   : > { %p999_p8 = por %p1174_p6, %p52_p9  ;;  %s42_s13 = ssub.s32 %s839_s19, %s1193_s11 }
  0x50   : > { %s200_s14 = sand.u32 1, %s831_s17   ;;  %p43_p12 = scmp.eq.s32.totalorder %s42_s13, 0 }
  0x51   : > { %s1175_s30 = scalar_select %p999_p8, 1, 0 }
  0x52   : > { %s1006_s29 = sshll.u32 %s200_s14, 4  ;;  %s539_s22 = sshll.u32 %s839_s19, 8 }
  0x53   : > { %s1010_s26 = scalar_select %p43_p12, %s831_s17, %s45_s12  }
  0x54   : > { %s1015_s6 = scalar_lea.hbm %s1155_s0, %s539_s22  ;;  %s204_s7 = scalar_lea.vmem [#allocation3], %s1006_s29 }
  0x55   : > { %s213_s8 = sshll.u32 %s204_s7, 4  ;;  %p1020_p11 = pnand %p577_p1, %p54_p4  ;;  %s1024_s8 = int_to_ptr.vmem [resolvable:$true] %s213_s8 }
  0x56   : > { %s1029_s12 = scalar_lea.hbm %s1156_s1, %s539_s22  ;;  %s201_s13 = scalar_lea.sflag [#allocation4], %s200_s14 }
  0x57   : > { %s689_s28 = scalar_lea.hbm %s1015_s6, 256  ;;  %p691_p3 = pneg %p1020_p11 }
  0x58   : > { %p690_p0 = scmp.ne.s32.totalorder %s1015_s6, %s689_s28  ;;  %s694_s2 = scalar_lea.hbm %s1155_s0, 512 }
  0x59   : > { %p695_p10 = scmp.lt.u32.totalorder %s1015_s6, %s1155_s0  ;;  %p696_p13 = scmp.lt.u32.totalorder %s694_s2, %s689_s28 }
  0x5a   : > { %p692_p5 = pnand %p691_p3, %p690_p0  ;;  %p698_p2 = scmp.lt.u32.totalorder %s689_s28, %s1015_s6 }
  0x5b   : > { %p697_p9 = por %p696_p13, %p695_p10 }
  0x5c   : > { %p693_p7 = pneg %p692_p5 }
  0x5d   : > { %p699_p1 = por %p698_p2, %p697_p9 }
  0x5f   : > { %p700_p4 = pnand %p699_p1, %p693_p7 }
  0x61   : > { %703 = shalt.err (!%p700_p4)
}
  0x62   : > { %s704_s14 = scalar_lea.vmem %s1024_s8, 256  ;;  %s847_s22 = smov [#allocation3]  }
  0x63   : > { %p705_p6 = scmp.ne.s32.totalorder %s1024_s8, %s704_s14  ;;  %s709_s9 = sshll.u32 %s847_s22, 4  ;;  %s710_s9 = int_to_ptr.vmem [resolvable:$false] %s709_s9 }
  0x64   : > { %s711_s3 = scalar_lea.vmem %s710_s9, 512  ;;  %p712_p5 = scmp.lt.s32.totalorder %s1024_s8, %s710_s9 }
  0x65   : > { %p707_p12 = pnand %p705_p6, %p691_p3  ;;  %p713_p10 = scmp.lt.s32.totalorder %s711_s3, %s704_s14 }
  0x67   : > { %p708_p0 = pneg %p707_p12  ;;  %p714_p13 = por %p713_p10, %p712_p5 }
  0x69   : > { %p715_p9 = pnand %p714_p13, %p708_p0 }
  0x6b   : > { %718 = shalt.err (!%p715_p9)
}
  0x6c   : > { %567 = dma.hbm_to_vmem [thread:$0]  (!%p1020_p11), %s1015_s6, 256, %s1024_s8, %s201_s13  }
  0x6d   : > { %s220_s2 = sand.u32 1, %s843_s20   ;;  %s224_s11 = scalar_lea.vmem [#allocation6], %s1006_s29 }
  0x6e   : > { %s233_s10 = sshll.u32 %s224_s11, 4  ;;  %s221_s28 = scalar_lea.sflag [#allocation7], %s220_s2  ;;  %s234_s10 = int_to_ptr.vmem [resolvable:$true] %s233_s10 }
  0x6f   : > { %s719_s5 = scalar_lea.hbm %s1029_s12, 256  ;;  %s724_s22 = scalar_lea.hbm %s1156_s1, 512 }
  0x70   : > { %p720_p7 = scmp.ne.s32.totalorder %s1029_s12, %s719_s5  ;;  %p725_p4 = scmp.lt.u32.totalorder %s1029_s12, %s1156_s1 }
  0x71   : > { %p726_p6 = scmp.lt.u32.totalorder %s724_s22, %s719_s5  ;;  %p728_p0 = scmp.lt.u32.totalorder %s719_s5, %s1029_s12 }
  0x72   : > { %p722_p2 = pnand %p720_p7, %p691_p3 }
  0x73   : > { %p727_p12 = por %p726_p6, %p725_p4 }
  0x74   : > { %p723_p1 = pneg %p722_p2 }
  0x75   : > { %p729_p5 = por %p728_p0, %p727_p12 }
  0x77   : > { %p730_p10 = pnand %p729_p5, %p723_p1 }
  0x79   : > { %733 = shalt.err (!%p730_p10)
}
  0x7a   : > { %s734_s29 = scalar_lea.vmem %s234_s10, 256  ;;  %s848_s6 = smov [#allocation6]  }
  0x7b   : > { %p735_p13 = scmp.ne.s32.totalorder %s234_s10, %s734_s29  ;;  %s739_s8 = sshll.u32 %s848_s6, 4  ;;  %s740_s8 = int_to_ptr.vmem [resolvable:$false] %s739_s8 }
  0x7c   : > { %s741_s13 = scalar_lea.vmem %s740_s8, 512  ;;  %p742_p2 = scmp.lt.s32.totalorder %s234_s10, %s740_s8 }
  0x7d   : > { %p737_p9 = pnand %p735_p13, %p691_p3  ;;  %p743_p8 = scmp.lt.s32.totalorder %s741_s13, %s734_s29 }
  0x7f   : > { %p738_p7 = pneg %p737_p9  ;;  %p744_p4 = por %p743_p8, %p742_p2 }
  0x81   : > { %p745_p6 = pnand %p744_p4, %p738_p7 }
  0x83   : > { %748 = shalt.err (!%p745_p6)
}
  0x84   : > { %570 = dma.hbm_to_vmem [thread:$0]  (!%p1020_p11), %s1029_s12, 256, %s234_s10, %s221_s28  }
  0x85   : > { %p1177_p1 = scmp.ne.s32.totalorder %s1169_s25, 0 }
  0x86   : > { %s1080_s2 = sand.u32 (!%p1177_p1), 1, %s827_s16   ;;  %p1178_p3 = scmp.ne.s32.totalorder (!%p1177_p1), %s1167_s23, 0 }
  0x87   : > { %242 = sbr.rel (%p1177_p1) target bundleno = 506 (0x1fa), region = 36  ;;  %s532_s11 = sshll.u32 (!%p1177_p1), %s1080_s2, 4 }
  0x88   : > { %s245_s5 = scalar_lea.sflag (!%p1177_p1), [#allocation4], %s1080_s2  ;;  %s248_s7 = scalar_lea.vmem (!%p1177_p1), [#allocation3], %s532_s11 }
  0x8e   : > { %802 = dma.done.wait (%p1178_p3), %s245_s5, 256  }
  0x8f   : > { %804 = vsyncadd (%p1178_p3), %s245_s5, 4294967040  ;;  %s253_s27 = sand.u32 1, %s908_s21   ;;  %s257_s25 = scalar_lea.vmem [#allocation6], %s532_s11 }
  0x90   : > { %s254_s12 = scalar_lea.sflag [#allocation7], %s253_s27 }
  0x91   : > { %806 = dma.done.wait (%p1178_p3), %s254_s12, 256  }
  0x92   : > { %808 = vsyncadd (%p1178_p3), %s254_s12, 4294967040  ;;  %p1179_p8 = scmp.eq.s32.totalorder %s908_s21, 0 }
  0x94   : > { %810 = dma.done.wait (%p1179_p8), [#allocation7], 32   ;;  %p1180_p11 = pmov %p1179_p8 }
  0x95   : > { %p1181_p12 = pmov %p1179_p8 }
  0x96   : > { %812 = vsyncadd (%p1180_p11), [#allocation7], 4294967264 }
  0x97   : > { %814 = dma.done.wait (%p1181_p12), [#allocation10], 32   ;;  %p1182_p0 = pmov %p1179_p8 }
  0x98   : > { %v302_v0 = vld [vmem:[%s248_s7] sm:$0xff]  ;;  %v303_v2 = vld [vmem:[%s248_s7 + $0x8] sm:$0xff]  ;;  %s849_s10 = smov 16   ;;  %s850_s23 = smov 1   ;;  %v312_v6 = vlaneseq  ;;  %vm386_vm2 = vcmask 0  }
  0x99   : > { %816 = vsyncadd (%p1182_p0), [#allocation10], 4294967264  ;;  %v304_v1 = vld [vmem:[%s257_s25] sm:$0xff]  ;;  %v305_v4 = vld [vmem:[%s257_s25 + $0x8] sm:$0xff]  ;;  %s536_s21 = sshll.u32 %s835_s18, 4  ;;  %s293_s28 = scalar_lea.vmem [#allocation11], %s1080_s2 }
  0x9a   : > { %v306_v3 = vsub.f32 %v302_v0, %v304_v1  ;;  %v307_v5 = vsub.f32 %v303_v2, %v305_v4  ;;  %v335_v7 = vshrl.u32 %v312_v6, 7  ;;  %v313_v8 = vand.u32 127, %v312_v6  ;;  %v346_v13 = vld [vmem:[#allocation9] sm:$0x3]  ;;  %v332_v14 = vld [vmem:[#allocation8] sm:$0x3]  ;;  %s1106_s3 = scalar_lea.hbm %s1159_s4, %s536_s21 }
  0x9b   : > { %s401_s14 = sshll.u32 %s293_s28, 4  ;;  %s389_s6 = scalar_lea.sflag [#allocation5], %s1080_s2  ;;  %s1108_s14 = int_to_ptr.vmem [resolvable:$true] %s401_s14 }
  0x9c   : > { %321 = vrot.lane.b32.xlu1 %v306_v3, %s849_s10  ;;  %308 = vrot.lane.b32.xlu0 %v306_v3, %s850_s23  ;;  %v336_v11 = vsub.s32 0, %v335_v7  ;;  %v340_v12 = vsub.s32 1, %v335_v7  ;;  %vm325_vm0 = vcmp.lt.s32.totalorder %v313_v8, 16  ;;  %vm314_vm1 = vcmp.lt.s32.totalorder %v313_v8, 1  ;;  %s749_s8 = scalar_lea.vmem %s1108_s14, 16  ;;  %p1183_p10 = scmp.ne.s32.totalorder %s1175_s30, 0 }
  0x9d   : > { %p750_p5 = scmp.ne.s32.totalorder %s1108_s14, %s749_s8  ;;  %s851_s18 = smov [#allocation11]  }
  0x9e   : > { %v351_v15 = vrot.slane %v346_v13, %v336_v11  ;;  %v355_v16 = vrot.slane %v346_v13, %v340_v12  ;;  %v337_v18 = vrot.slane %v332_v14, %v336_v11  ;;  %v341_v28 = vrot.slane %v332_v14, %v340_v12  ;;  %s753_s13 = sshll.u32 %s851_s18, 4  ;;  %s754_s13 = int_to_ptr.vmem [resolvable:$false] %s753_s13 }
  0x9f   : > { %p751_p13 = pnand %p750_p5, %p1183_p10  ;;  %s755_s11 = scalar_lea.vmem %s754_s13, 32 }
  0xa0   : > { %323 = vrot.lane.b32.xlu1 %v307_v5, %s849_s10  ;;  %310 = vrot.lane.b32.xlu0 %v307_v5, %s850_s23  ;;  %p756_p7 = scmp.lt.s32.totalorder %s1108_s14, %s754_s13  ;;  %p757_p2 = scmp.lt.s32.totalorder %s755_s11, %s749_s8 }
  0xa1   : > { %p752_p9 = pneg %p751_p13 }
  0xa2   : > { %p758_p4 = por %p757_p2, %p756_p7 }
  0xa4   : > { %p759_p6 = pnand %p758_p4, %p752_p9 }
 0x10e   : > { %v322_v9 = vpop.permute.xlu1 %321  ;;  %v309_v10 = vpop.permute.xlu0 %308 }
 0x112   : > { %v324_v17 = vpop.permute.xlu1 %323  ;;  %v311_v19 = vpop.permute.xlu0 %310 }
 0x113   : > { %v326_v20 = vsel %vm325_vm0, %v322_v9, %v324_v17  ;;  %v327_v21 = vsel %vm325_vm0, %v324_v17, %v322_v9  ;;  %v315_v22 = vsel %vm314_vm1, %v309_v10, %v311_v19  ;;  %v316_v23 = vsel %vm314_vm1, %v311_v19, %v309_v10 }
 0x114   : > { %v328_v24 = vsub.f32 %v306_v3, %v327_v21  ;;  %v329_v25 = vsub.f32 %v307_v5, %v326_v20  ;;  %v317_v26 = vsub.f32 %v306_v3, %v316_v23  ;;  %v318_v27 = vsub.f32 %v307_v5, %v315_v22 }
 0x116   : > { %v330_v29 = vand.u32 2147483647, %v328_v24  ;;  %v331_v30 = vand.u32 2147483647, %v329_v25  ;;  %v319_v31 = vand.u32 2147483647, %v317_v26 }
 0x117   : > { %v320_v32 = vand.u32 2147483647, %v318_v27 }
 0x118   : > { %v358_v33 = vmul.f32 %v351_v15, %v330_v29  ;;  %v359_v34 = vmul.f32 %v355_v16, %v331_v30  ;;  %v344_v35 = vmul.f32 %v337_v18, %v319_v31 }
 0x119   : > { %v345_v36 = vmul.f32 %v341_v28, %v320_v32 }
 0x11a   : > { %v360_v37 = vadd.f32 %v358_v33, %v344_v35 }
 0x11b   : > { %v361_v38 = vadd.f32 %v359_v34, %v345_v36 }
 0x11d   : > { %v375_v39 = vadd.f32 %v361_v38, %v360_v37 }
 0x11f   : > { %376 = vadd.xlane.f32.xlu0 %v375_v39 }
 0x1ac   : > { %v377_v40 = vpop.xlane.xlu0 %376 }
 0x1ad   : > { %v378_v41 = vrot.slane %v377_v40, 4 }
 0x1af   : > { %v379_v42 = vadd.f32 %v378_v41, %v377_v40 }
 0x1b1   : > { %v380_v43 = vrot.slane %v379_v42, 2 }
 0x1b3   : > { %v381_v44 = vadd.f32 %v380_v43, %v379_v42 }
 0x1b5   : > { %v382_v45 = vrot.slane %v381_v44, 1 }
 0x1b7   : > { %v383_v46 = vadd.f32 %v382_v45, %v381_v44 }
 0x1b9   : > { %541 = vpush %v383_v46 }
 0x1ea   : > { %s542_s29 = spop %541 }
 0x1eb   : > { %v385_v47 = vstv %s542_s29 }
 0x1ec   : > { %387 = vst.msk [vmem:[%s293_s28] sm:$0x1] %vm386_vm2, %v385_v47 }
 0x1ed   : > { %762 = shalt.err (!%p759_p6)
}
 0x1ee   : > { %s763_s2 = scalar_lea.hbm %s1106_s3, 16  ;;  %s767_s27 = scalar_lea.hbm %s1159_s4, 32 }
 0x1ef   : > { %p764_p1 = scmp.ne.s32.totalorder %s1106_s3, %s763_s2  ;;  %p768_p11 = scmp.lt.u32.totalorder %s1106_s3, %s1159_s4 }
 0x1f0   : > { %p769_p12 = scmp.lt.u32.totalorder %s767_s27, %s763_s2  ;;  %p771_p5 = scmp.lt.u32.totalorder %s763_s2, %s1106_s3 }
 0x1f1   : > { %p765_p3 = pnand %p764_p1, %p1183_p10 }
 0x1f2   : > { %p770_p0 = por %p769_p12, %p768_p11 }
 0x1f3   : > { %p766_p8 = pneg %p765_p3 }
 0x1f4   : > { %p772_p13 = por %p771_p5, %p770_p0 }
 0x1f6   : > { %p773_p9 = pnand %p772_p13, %p766_p8 }
 0x1f8   : > { %776 = shalt.err (!%p773_p9)
}
 0x1f9   : > { %555 = dma.vmem_to_hbm [thread:$0]  (%p1183_p10), %s1108_s14, 16, %s1106_s3, %s389_s6  }
 0x1fa PF: > { %s413_s10 = sand.u32 1, %s823_s15   ;;  %p1184_p7 = scmp.ne.s32.totalorder %s1168_s24, 0 }
 0x1fb   : > { %p1185_p2 = scmp.ge.s32.totalorder %s843_s20, 2  ;;  %s414_s23 = scalar_lea.sflag [#allocation5], %s413_s10 }
 0x1fd   : > { %p572_p4 = pnand %p1185_p2, %p1184_p7 }
 0x1ff   : > { %818 = dma.done.wait (!%p572_p4), %s414_s23, 16  }
 0x200   : > { %820 = vsyncadd (!%p572_p4), %s414_s23, 4294967280  ;;  %s24_s20 = sadd.s32 1, %s843_s20   ;;  %s1186_s30 = sld [smem:[#allocation17_spill]] }
 0x201   : > { %p21_p6 = scmp.ge.s32.totalorder %s24_s20, 4   ;;  %s1187_s15 = smov %s827_s16 }
 0x202   : > { %s1188_s16 = smov %s831_s17  ;;  %s1189_s17 = smov %s1010_s26 }
 0x203   : > { %s1190_s18 = smov %s839_s19  ;;  %23 = sbr.rel (!%p21_p6) target bundleno = 12 (0xc), region = 110 }
 0x206   : > { %s1191_s19 = smov %s1186_s30 }
 0x20a   :  { %418 = vsyncpa [#allocation4], 1 }
 0x20b   :  { %420 = vsyncpa [#allocation4 + $0x1], 1 }
 0x20c   :  { %421 = vsyncpa [#allocation7], 1 }
 0x20d   :  { %423 = vsyncpa [#allocation7 + $0x1], 1 }
 0x20e   :  { %424 = vsyncpa [#allocation10], 1 }
 0x20f   :  { %425 = vsyncpa [#allocation5], 1 }
 0x210   :  { %427 = vsyncpa [#allocation5 + $0x1], 1 }

</bundles_post_ra>
